<compile_context>
chip_gen: v7x
topology: tpu7x:2x2x1
jax: 0.10.0
libtpu: 0.0.40
codegen_flags: <defaults>
</compile_context>

<pallas_src>
import functools
import math

import jax
import jax.numpy as jnp
from jax.experimental import pallas as pl
from jax.experimental.pallas import tpu as pltpu


# ------------------------------ small helpers ------------------------------

def _pick_tile(total, prefs):
    """Largest preferred tile that evenly divides `total`, else the full dim."""
    for t in prefs:
        if total > t and total % t == 0:
            return t
    return total


def _layernorm(x, gamma, beta, eps=1e-5):
    # one-pass variance: var = E[x^2] - E[x]^2  (fewer cross-lane reductions)
    mu = jnp.mean(x, axis=-1, keepdims=True)
    var = jnp.mean(x * x, axis=-1, keepdims=True) - mu * mu
    inv = jax.lax.rsqrt(var + eps)
    return (x - mu) * inv * gamma + beta


def _gelu_tanh(x):
    c = math.sqrt(2.0 / math.pi)
    return 0.5 * x * (1.0 + jnp.tanh(c * (x + 0.044715 * x * x * x)))


# --------------------- kernel 1: LayerNorm + Linear (+GELU) -----------------

def ln_matmul_kernel(x_ref, g_ref, b_ref, w_ref, bias_ref, o_ref, *, activation):
    x = x_ref[...]                                        # (TR, C) fp32
    h = _layernorm(x, g_ref[...], b_ref[...])             # fp32 statistics
    acc = jnp.dot(h.astype(jnp.bfloat16),
                  w_ref[...].astype(jnp.bfloat16),
                  preferred_element_type=jnp.float32) + bias_ref[...]
    if activation == "gelu":
        acc = _gelu_tanh(acc)
    o_ref[...] = acc.astype(o_ref.dtype)


def ln_matmul(x, gamma, beta, w, bias, *, activation, out_dtype):
    R, C = x.shape
    N = w.shape[1]
    TR = _pick_tile(R, (256, 128))
    TN = _pick_tile(N, (512, 384, 256, 128))
    grid = (R // TR, N // TN)
    return pl.pallas_call(
        functools.partial(ln_matmul_kernel, activation=activation),
        out_shape=jax.ShapeDtypeStruct((R, N), out_dtype),
        grid=grid,
        in_specs=[pl.BlockSpec((TR, C), lambda r, n: (r, 0)),
                  pl.BlockSpec((1, C), lambda r, n: (0, 0)),
                  pl.BlockSpec((1, C), lambda r, n: (0, 0)),
                  pl.BlockSpec((C, TN), lambda r, n: (0, n)),
                  pl.BlockSpec((1, TN), lambda r, n: (0, n))],
        out_specs=pl.BlockSpec((TR, TN), lambda r, n: (r, n)),
        compiler_params=pltpu.CompilerParams(
            dimension_semantics=("parallel", "parallel")),
    )(x, gamma, beta, w, bias)


# ----------------- kernel 2: causal attention (heads batched) ---------------

def attention_kernel(q_ref, k_ref, v_ref, o_ref):
    # q_ref: (H, TQ, D)  k_ref/v_ref: (H, T, D)   (bf16)
    H, TQ, D = q_ref.shape
    T = k_ref.shape[1]
    scale = 1.0 / math.sqrt(D)

    q = q_ref[...]
    k = k_ref[...]
    v = v_ref[...]

    # single batched MXU call over all heads (no per-head Python loop)
    s = jnp.einsum('hqd,hkd->hqk', q, k,
                   preferred_element_type=jnp.float32) * scale

    q_off = pl.program_id(1) * TQ
    row = jax.lax.broadcasted_iota(jnp.int32, (TQ, T), 0) + q_off
    col = jax.lax.broadcasted_iota(jnp.int32, (TQ, T), 1)
    s = jnp.where((row >= col)[None, :, :], s, -1e30)

    m = jnp.max(s, axis=-1, keepdims=True)
    p = jnp.exp(s - m)
    denom = jnp.sum(p, axis=-1, keepdims=True)
    p = p * pl.reciprocal(denom, approx=True)             # EUP, ~free

    y = jnp.einsum('hqk,hkd->hqd', p.astype(jnp.bfloat16), v,
                   preferred_element_type=jnp.float32)
    o_ref[...] = y.astype(o_ref.dtype)


def causal_attention(q, k, v):
    B, H, T, D = q.shape
    TQ = _pick_tile(T, (256, 128))
    grid = (B, T // TQ)
    return pl.pallas_call(
        attention_kernel,
        out_shape=jax.ShapeDtypeStruct((B, H, T, D), jnp.bfloat16),
        grid=grid,
        in_specs=[pl.BlockSpec((None, H, TQ, D), lambda b, qt: (b, 0, qt, 0)),
                  pl.BlockSpec((None, H, T, D), lambda b, qt: (b, 0, 0, 0)),
                  pl.BlockSpec((None, H, T, D), lambda b, qt: (b, 0, 0, 0))],
        out_specs=pl.BlockSpec((None, H, TQ, D), lambda b, qt: (b, 0, qt, 0)),
        compiler_params=pltpu.CompilerParams(
            dimension_semantics=("parallel", "parallel")),
    )(q, k, v)


# ------------------- kernel 3: Linear + residual add ------------------------

def matmul_residual_kernel(y_ref, w_ref, bias_ref, r_ref, o_ref):
    acc = jnp.dot(y_ref[...].astype(jnp.bfloat16),
                  w_ref[...].astype(jnp.bfloat16),
                  preferred_element_type=jnp.float32) + bias_ref[...]
    o_ref[...] = r_ref[...] + acc                          # residual in fp32


def matmul_residual(y, w, bias, resid):
    R, K = y.shape
    C = w.shape[1]
    TR = _pick_tile(R, (256, 128))
    grid = (R // TR,)
    return pl.pallas_call(
        matmul_residual_kernel,
        out_shape=jax.ShapeDtypeStruct((R, C), jnp.float32),
        grid=grid,
        in_specs=[pl.BlockSpec((TR, K), lambda r: (r, 0)),
                  pl.BlockSpec((K, C), lambda r: (0, 0)),
                  pl.BlockSpec((1, C), lambda r: (0, 0)),
                  pl.BlockSpec((TR, C), lambda r: (r, 0))],
        out_specs=pl.BlockSpec((TR, C), lambda r: (r, 0)),
        compiler_params=pltpu.CompilerParams(
            dimension_semantics=("parallel",)),
    )(y, w, bias, resid)


# ---------------- kernel 4: final LayerNorm + tied lm_head ------------------

def lm_head_kernel(x_ref, g_ref, b_ref, w_ref, o_ref):
    h = _layernorm(x_ref[...], g_ref[...], b_ref[...]).astype(jnp.bfloat16)
    # wte tile is (TV, C); contract C with C (no transposed copy in HBM)
    o_ref[...] = jax.lax.dot_general(
        h, w_ref[...].astype(jnp.bfloat16),
        dimension_numbers=(((1,), (1,)), ((), ())),
        preferred_element_type=jnp.float32)


def lm_head(x, gamma, beta, wte):
    R, C = x.shape
    V = wte.shape[0]
    TR = _pick_tile(R, (256, 128))
    TV = _pick_tile(V, (2048, 1024, 512, 256, 128))
    grid = (R // TR, V // TV)
    return pl.pallas_call(
        lm_head_kernel,
        out_shape=jax.ShapeDtypeStruct((R, V), jnp.float32),
        grid=grid,
        in_specs=[pl.BlockSpec((TR, C), lambda r, v: (r, 0)),
                  pl.BlockSpec((1, C), lambda r, v: (0, 0)),
                  pl.BlockSpec((1, C), lambda r, v: (0, 0)),
                  pl.BlockSpec((TV, C), lambda r, v: (v, 0))],
        out_specs=pl.BlockSpec((TR, TV), lambda r, v: (r, v)),
        compiler_params=pltpu.CompilerParams(
            dimension_semantics=("parallel", "parallel")),
    )(x, gamma, beta, wte)


# ------------------------------- full model --------------------------------

def gpt_forward(idx, params, cfg):
    B, T = idx.shape
    C, H = cfg['n_embd'], cfg['n_head']
    D = C // H
    assert T <= cfg['block_size']

    # glue: data-dependent embedding gather + positional add (not kernel work)
    tok = jnp.take(params['wte'], idx, axis=0).astype(jnp.float32)   # (B,T,C)
    pos = params['wpe'][:T].astype(jnp.float32)                       # (T,C)
    x = (tok + pos[None, :, :]).reshape(B * T, C)                     # fp32 residual stream

    for blk in params['blocks']:
        # ---- attention branch ----
        qkv = ln_matmul(x, blk['ln1_g'], blk['ln1_b'],
                        blk['w_attn'], blk['b_attn'],
                        activation=None, out_dtype=jnp.bfloat16)      # (B*T, 3C)
        qkv = qkv.reshape(B, T, 3, H, D)
        q = jnp.transpose(qkv[:, :, 0], (0, 2, 1, 3))                 # (B,H,T,D)
        k = jnp.transpose(qkv[:, :, 1], (0, 2, 1, 3))
        v = jnp.transpose(qkv[:, :, 2], (0, 2, 1, 3))
        y = causal_attention(q, k, v)                                 # (B,H,T,D) bf16
        y = jnp.transpose(y, (0, 2, 1, 3)).reshape(B * T, C)
        x = matmul_residual(y, blk['w_proj'], blk['b_proj'], x)       # residual 1

        # ---- MLP branch ----
        hid = ln_matmul(x, blk['ln2_g'], blk['ln2_b'],
                        blk['w_fc'], blk['b_fc'],
                        activation='gelu', out_dtype=jnp.bfloat16)    # (B*T, 4C)
        x = matmul_residual(hid, blk['w_fcproj'], blk['b_fcproj'], x)  # residual 2

    logits = lm_head(x, params['ln_f_g'], params['ln_f_b'], params['wte'])
    # TODO(synk): cross-entropy loss (targets path) not implemented; forward
    # with targets=None returns (logits, None) in the reference.
    return logits.reshape(B, T, -1)


# ----------------------------- parameter init ------------------------------

def init_params(key, cfg):
    V, Tmax, C, L = (cfg['vocab_size'], cfg['block_size'],
                     cfg['n_embd'], cfg['n_layer'])
    ks = iter(jax.random.split(key, 4 * L + 2))

    def nrm(shape, std, dtype):
        return (std * jax.random.normal(next(ks), shape)).astype(dtype)

    std = 0.02
    pstd = 0.02 * (2 * L) ** -0.5          # NANOGPT_SCALE_INIT projections

    params = {
        'wte': nrm((V, C), std, jnp.bfloat16),    # tied with lm_head, bf16 in HBM
        'wpe': nrm((Tmax, C), std, jnp.float32),
        'ln_f_g': jnp.ones((1, C), jnp.float32),
        'ln_f_b': jnp.zeros((1, C), jnp.float32),
        'blocks': [],
    }
    for _ in range(L):
        params['blocks'].append({
            'ln1_g': jnp.ones((1, C), jnp.float32),
            'ln1_b': jnp.zeros((1, C), jnp.float32),
            'w_attn': nrm((C, 3 * C), std, jnp.bfloat16),
            'b_attn': jnp.zeros((1, 3 * C), jnp.float32),
            'w_proj': nrm((C, C), pstd, jnp.bfloat16),
            'b_proj': jnp.zeros((1, C), jnp.float32),
            'ln2_g': jnp.ones((1, C), jnp.float32),
            'ln2_b': jnp.zeros((1, C), jnp.float32),
            'w_fc': nrm((C, 4 * C), std, jnp.bfloat16),
            'b_fc': jnp.zeros((1, 4 * C), jnp.float32),
            'w_fcproj': nrm((4 * C, C), pstd, jnp.bfloat16),
            'b_fcproj': jnp.zeros((1, C), jnp.float32),
        })
    return params


# ---------------------------------- main ------------------------------------

if __name__ == "__main__":
    cfg = dict(vocab_size=64, block_size=16, n_embd=32, n_head=2, n_layer=2)

    key = jax.random.PRNGKey(0)
    pkey, ikey = jax.random.split(key)
    params = init_params(pkey, cfg)

    B, T = 2, 8
    idx = jax.random.randint(ikey, (B, T), 0, cfg['vocab_size'], dtype=jnp.int32)

    fwd = jax.jit(lambda i, p: gpt_forward(i, p, cfg))
    logits = fwd(idx, params)
    logits = jax.block_until_ready(logits)

    assert logits.shape == (B, T, cfg['vocab_size'])
    assert bool(jnp.all(jnp.isfinite(logits)))
    print("KERNEL_OK")
</pallas_src>

<mosaic_0001>
module attributes {stable_mosaic.version = 11 : i64} {
  func.func @attention_kernel(%arg0: i32, %arg1: i32, %arg2: memref<1x2x8x16xbf16, #tpu.memory_space<vmem>>, %arg3: memref<1x2x8x16xbf16, #tpu.memory_space<vmem>>, %arg4: memref<1x2x8x16xbf16, #tpu.memory_space<vmem>>, %arg5: memref<1x2x8x16xbf16, #tpu.memory_space<vmem>>) attributes {dimension_semantics = [#tpu.dimension_semantics<parallel>, #tpu.dimension_semantics<parallel>], iteration_bounds = array<i64: 2, 1>, scalar_prefetch = 0 : i64, scratch_operands = 0 : i64, tpu.core_type = #tpu.core_type<tc>, window_params = [{transform_indices = @transform_0, window_bounds = array<i64: 1, 2, 8, 16>}, {transform_indices = @transform_1, window_bounds = array<i64: 1, 2, 8, 16>}, {transform_indices = @transform_2, window_bounds = array<i64: 1, 2, 8, 16>}, {transform_indices = @transform_3, window_bounds = array<i64: 1, 2, 8, 16>}]} {
    %c0 = arith.constant 0 : index
    %c0_0 = arith.constant 0 : index
    %c0_1 = arith.constant 0 : index
    %c0_2 = arith.constant 0 : index
    %0 = vector.load %arg2[%c0, %c0_0, %c0_1, %c0_2] : memref<1x2x8x16xbf16, #tpu.memory_space<vmem>>, vector<1x2x8x16xbf16>
    %1 = vector.shape_cast %0 : vector<1x2x8x16xbf16> to vector<2x8x16xbf16>
    %c0_3 = arith.constant 0 : index
    %c0_4 = arith.constant 0 : index
    %c0_5 = arith.constant 0 : index
    %c0_6 = arith.constant 0 : index
    %2 = vector.load %arg3[%c0_3, %c0_4, %c0_5, %c0_6] : memref<1x2x8x16xbf16, #tpu.memory_space<vmem>>, vector<1x2x8x16xbf16>
    %3 = vector.shape_cast %2 : vector<1x2x8x16xbf16> to vector<2x8x16xbf16>
    %c0_7 = arith.constant 0 : index
    %c0_8 = arith.constant 0 : index
    %c0_9 = arith.constant 0 : index
    %c0_10 = arith.constant 0 : index
    %4 = vector.load %arg4[%c0_7, %c0_8, %c0_9, %c0_10] : memref<1x2x8x16xbf16, #tpu.memory_space<vmem>>, vector<1x2x8x16xbf16>
    %5 = vector.shape_cast %4 : vector<1x2x8x16xbf16> to vector<2x8x16xbf16>
    "tpu.trace_start"() <{level = 10 : i32, message = "hqd,hkd->hqk"}> : () -> ()
    %cst = arith.constant dense<0.000000e+00> : vector<2x8x8xf32>
    %6 = tpu.matmul %1, %3, %cst {dimension_numbers = #tpu.dot_dimension_numbers<[2], [2], [1], [1], [0, 0, 0, 1, 1, 1], [0], [0]>} : vector<2x8x16xbf16>, vector<2x8x16xbf16>, vector<2x8x8xf32> -> vector<2x8x8xf32>
    "tpu.trace_stop"() : () -> ()
    %cst_11 = arith.constant 2.500000e-01 : f32
    %7 = vector.broadcast %cst_11 : f32 to vector<2x8x8xf32>
    %8 = arith.mulf %6, %7 : vector<2x8x8xf32>
    %c8_i32 = arith.constant 8 : i32
    %9 = arith.muli %arg1, %c8_i32 : i32
    %10 = tpu.iota {dimensions = array<i32: 0>} : vector<8x8xi32>
    %11 = vector.broadcast %9 : i32 to vector<8x8xi32>
    %12 = arith.addi %10, %11 : vector<8x8xi32>
    %13 = tpu.iota {dimensions = array<i32: 1>} : vector<8x8xi32>
    %14 = arith.cmpi sge, %12, %13 : vector<8x8xi32>
    %15 = vector.shape_cast %14 : vector<8x8xi1> to vector<1x8x8xi1>
    %cst_12 = arith.constant -1.000000e+30 : f32
    %16 = vector.shape_cast %15 : vector<1x8x8xi1> to vector<1x8x8xi1>
    %17 = vector.broadcast %16 : vector<1x8x8xi1> to vector<2x8x8xi1>
    %18 = vector.broadcast %cst_12 : f32 to vector<2x8x8xf32>
    %19 = arith.select %17, %8, %18 : vector<2x8x8xi1>, vector<2x8x8xf32>
    %cst_13 = arith.constant dense<0xFF800000> : vector<2x8xf32>
    %20 = vector.multi_reduction <maximumf>, %19, %cst_13 [2] : vector<2x8x8xf32> to vector<2x8xf32>
    %21 = vector.shape_cast %20 : vector<2x8xf32> to vector<2x8x1xf32>
    %22 = vector.broadcast %21 : vector<2x8x1xf32> to vector<2x8x8xf32>
    %23 = arith.subf %19, %22 : vector<2x8x8xf32>
    %24 = math.exp %23 : vector<2x8x8xf32>
    %cst_14 = arith.constant dense<0.000000e+00> : vector<2x8xf32>
    %25 = vector.multi_reduction <add>, %24, %cst_14 [2] : vector<2x8x8xf32> to vector<2x8xf32>
    %26 = vector.shape_cast %25 : vector<2x8xf32> to vector<2x8x1xf32>
    %27 = tpu.reciprocal %26 {approx = true} : vector<2x8x1xf32> -> vector<2x8x1xf32>
    %28 = vector.broadcast %27 : vector<2x8x1xf32> to vector<2x8x8xf32>
    %29 = arith.mulf %24, %28 : vector<2x8x8xf32>
    %30 = arith.truncf %29 : vector<2x8x8xf32> to vector<2x8x8xbf16>
    "tpu.trace_start"() <{level = 10 : i32, message = "hqk,hkd->hqd"}> : () -> ()
    %cst_15 = arith.constant dense<0.000000e+00> : vector<2x8x16xf32>
    %31 = tpu.matmul %30, %5, %cst_15 {dimension_numbers = #tpu.dot_dimension_numbers<[2], [1], [1], [2], [0, 0, 0, 1, 1, 2], [0], [0]>} : vector<2x8x8xbf16>, vector<2x8x16xbf16>, vector<2x8x16xf32> -> vector<2x8x16xf32>
    "tpu.trace_stop"() : () -> ()
    %32 = arith.truncf %31 : vector<2x8x16xf32> to vector<2x8x16xbf16>
    %c0_16 = arith.constant 0 : index
    %c0_17 = arith.constant 0 : index
    %c0_18 = arith.constant 0 : index
    %c0_19 = arith.constant 0 : index
    %33 = vector.load %arg5[%c0_16, %c0_17, %c0_18, %c0_19] : memref<1x2x8x16xbf16, #tpu.memory_space<vmem>>, vector<1x2x8x16xbf16>
    %34 = vector.shape_cast %33 : vector<1x2x8x16xbf16> to vector<2x8x16xbf16>
    %35 = vector.shape_cast %32 : vector<2x8x16xbf16> to vector<1x2x8x16xbf16>
    tpu.vector_store %arg5[%c0_16, %c0_17, %c0_18, %c0_19], %35 {strides = array<i32>} : memref<1x2x8x16xbf16, #tpu.memory_space<vmem>>, vector<1x2x8x16xbf16>,
    return
  }
  func.func @transform_0(%arg0: i32, %arg1: i32) -> (i32, i32, i32, i32) {
    %c0_i32 = arith.constant 0 : i32
    %c0_i32_0 = arith.constant 0 : i32
    %c0_i32_1 = arith.constant 0 : i32
    return %arg0, %c0_i32, %arg1, %c0_i32_0 : i32, i32, i32, i32
  }
  func.func @transform_1(%arg0: i32, %arg1: i32) -> (i32, i32, i32, i32) {
    %c0_i32 = arith.constant 0 : i32
    %c0_i32_0 = arith.constant 0 : i32
    %c0_i32_1 = arith.constant 0 : i32
    %c0_i32_2 = arith.constant 0 : i32
    return %arg0, %c0_i32, %c0_i32_0, %c0_i32_1 : i32, i32, i32, i32
  }
  func.func @transform_2(%arg0: i32, %arg1: i32) -> (i32, i32, i32, i32) {
    %c0_i32 = arith.constant 0 : i32
    %c0_i32_0 = arith.constant 0 : i32
    %c0_i32_1 = arith.constant 0 : i32
    %c0_i32_2 = arith.constant 0 : i32
    return %arg0, %c0_i32, %c0_i32_0, %c0_i32_1 : i32, i32, i32, i32
  }
  func.func @transform_3(%arg0: i32, %arg1: i32) -> (i32, i32, i32, i32) {
    %c0_i32 = arith.constant 0 : i32
    %c0_i32_0 = arith.constant 0 : i32
    %c0_i32_1 = arith.constant 0 : i32
    return %arg0, %c0_i32, %arg1, %c0_i32_0 : i32, i32, i32, i32
  }
}

module attributes {stable_mosaic.version = 11 : i64} {
  func.func @ln_matmul_kernel(%arg0: i32, %arg1: i32, %arg2: memref<16x32xf32, #tpu.memory_space<vmem>>, %arg3: memref<1x32xf32, #tpu.memory_space<vmem>>, %arg4: memref<1x32xf32, #tpu.memory_space<vmem>>, %arg5: memref<32x96xbf16, #tpu.memory_space<vmem>>, %arg6: memref<1x96xf32, #tpu.memory_space<vmem>>, %arg7: memref<16x96xbf16, #tpu.memory_space<vmem>>) attributes {dimension_semantics = [#tpu.dimension_semantics<parallel>, #tpu.dimension_semantics<parallel>], iteration_bounds = array<i64: 1, 1>, scalar_prefetch = 0 : i64, scratch_operands = 0 : i64, tpu.core_type = #tpu.core_type<tc>, window_params = [{transform_indices = @transform_0, window_bounds = array<i64: 16, 32>}, {pipeline_mode = #tpu.pipeline_mode<synchronous>, transform_indices = @transform_1, window_bounds = array<i64: 1, 32>}, {pipeline_mode = #tpu.pipeline_mode<synchronous>, transform_indices = @transform_2, window_bounds = array<i64: 1, 32>}, {transform_indices = @transform_3, window_bounds = array<i64: 32, 96>}, {transform_indices = @transform_4, window_bounds = array<i64: 1, 96>}, {transform_indices = @transform_5, window_bounds = array<i64: 16, 96>}]} {
    %c0 = arith.constant 0 : index
    %c0_0 = arith.constant 0 : index
    %0 = vector.load %arg2[%c0, %c0_0] : memref<16x32xf32, #tpu.memory_space<vmem>>, vector<16x32xf32>
    %c0_1 = arith.constant 0 : index
    %c0_2 = arith.constant 0 : index
    %1 = vector.load %arg3[%c0_1, %c0_2] : memref<1x32xf32, #tpu.memory_space<vmem>>, vector<1x32xf32>
    %c0_3 = arith.constant 0 : index
    %c0_4 = arith.constant 0 : index
    %2 = vector.load %arg4[%c0_3, %c0_4] : memref<1x32xf32, #tpu.memory_space<vmem>>, vector<1x32xf32>
    %cst = arith.constant dense<0.000000e+00> : vector<16xf32>
    %3 = vector.multi_reduction <add>, %0, %cst [1] : vector<16x32xf32> to vector<16xf32>
    %4 = vector.shape_cast %3 : vector<16xf32> to vector<16x1xf32>
    %cst_5 = arith.constant 3.200000e+01 : f32
    %5 = vector.broadcast %cst_5 : f32 to vector<16x1xf32>
    %6 = arith.divf %4, %5 : vector<16x1xf32>
    %7 = arith.mulf %0, %0 : vector<16x32xf32>
    %cst_6 = arith.constant dense<0.000000e+00> : vector<16xf32>
    %8 = vector.multi_reduction <add>, %7, %cst_6 [1] : vector<16x32xf32> to vector<16xf32>
    %9 = vector.shape_cast %8 : vector<16xf32> to vector<16x1xf32>
    %cst_7 = arith.constant 3.200000e+01 : f32
    %10 = vector.broadcast %cst_7 : f32 to vector<16x1xf32>
    %11 = arith.divf %9, %10 : vector<16x1xf32>
    %12 = arith.mulf %6, %6 : vector<16x1xf32>
    %13 = arith.subf %11, %12 : vector<16x1xf32>
    %cst_8 = arith.constant 9.99999974E-6 : f32
    %14 = vector.broadcast %cst_8 : f32 to vector<16x1xf32>
    %15 = arith.addf %13, %14 : vector<16x1xf32>
    %16 = math.rsqrt %15 : vector<16x1xf32>
    %17 = vector.broadcast %6 : vector<16x1xf32> to vector<16x32xf32>
    %18 = arith.subf %0, %17 : vector<16x32xf32>
    %19 = vector.broadcast %16 : vector<16x1xf32> to vector<16x32xf32>
    %20 = arith.mulf %18, %19 : vector<16x32xf32>
    %21 = vector.broadcast %1 : vector<1x32xf32> to vector<16x32xf32>
    %22 = arith.mulf %20, %21 : vector<16x32xf32>
    %23 = vector.broadcast %2 : vector<1x32xf32> to vector<16x32xf32>
    %24 = arith.addf %22, %23 : vector<16x32xf32>
    %25 = arith.truncf %24 : vector<16x32xf32> to vector<16x32xbf16>
    %c0_9 = arith.constant 0 : index
    %c0_10 = arith.constant 0 : index
    %26 = vector.load %arg5[%c0_9, %c0_10] : memref<32x96xbf16, #tpu.memory_space<vmem>>, vector<32x96xbf16>
    %cst_11 = arith.constant dense<0.000000e+00> : vector<16x96xf32>
    %27 = tpu.matmul %25, %26, %cst_11 {dimension_numbers = #tpu.dot_dimension_numbers<[1], [0], [0], [1], [0, 0, 1, 1], [], []>} : vector<16x32xbf16>, vector<32x96xbf16>, vector<16x96xf32> -> vector<16x96xf32>
    %c0_12 = arith.constant 0 : index
    %c0_13 = arith.constant 0 : index
    %28 = vector.load %arg6[%c0_12, %c0_13] : memref<1x96xf32, #tpu.memory_space<vmem>>, vector<1x96xf32>
    %29 = vector.broadcast %28 : vector<1x96xf32> to vector<16x96xf32>
    %30 = arith.addf %27, %29 : vector<16x96xf32>
    %31 = arith.truncf %30 : vector<16x96xf32> to vector<16x96xbf16>
    %c0_14 = arith.constant 0 : index
    %c0_15 = arith.constant 0 : index
    %32 = vector.load %arg7[%c0_14, %c0_15] : memref<16x96xbf16, #tpu.memory_space<vmem>>, vector<16x96xbf16>
    tpu.vector_store %arg7[%c0_14, %c0_15], %31 {strides = array<i32>} : memref<16x96xbf16, #tpu.memory_space<vmem>>, vector<16x96xbf16>,
    return
  }
  func.func @transform_0(%arg0: i32, %arg1: i32) -> (i32, i32) {
    %c0_i32 = arith.constant 0 : i32
    %c0_i32_0 = arith.constant 0 : i32
    return %arg0, %c0_i32 : i32, i32
  }
  func.func @transform_1(%arg0: i32, %arg1: i32) -> (i32, i32) {
    %c0_i32 = arith.constant 0 : i32
    %c0_i32_0 = arith.constant 0 : i32
    %c0_i32_1 = arith.constant 0 : i32
    return %c0_i32, %c0_i32_0 : i32, i32
  }
  func.func @transform_2(%arg0: i32, %arg1: i32) -> (i32, i32) {
    %c0_i32 = arith.constant 0 : i32
    %c0_i32_0 = arith.constant 0 : i32
    %c0_i32_1 = arith.constant 0 : i32
    return %c0_i32, %c0_i32_0 : i32, i32
  }
  func.func @transform_3(%arg0: i32, %arg1: i32) -> (i32, i32) {
    %c0_i32 = arith.constant 0 : i32
    %c0_i32_0 = arith.constant 0 : i32
    return %c0_i32, %arg1 : i32, i32
  }
  func.func @transform_4(%arg0: i32, %arg1: i32) -> (i32, i32) {
    %c0_i32 = arith.constant 0 : i32
    %c0_i32_0 = arith.constant 0 : i32
    return %c0_i32, %arg1 : i32, i32
  }
  func.func @transform_5(%arg0: i32, %arg1: i32) -> (i32, i32) {
    %c0_i32 = arith.constant 0 : i32
    return %arg0, %arg1 : i32, i32
  }
}

module attributes {stable_mosaic.version = 11 : i64} {
  func.func @matmul_residual_kernel(%arg0: i32, %arg1: memref<16x32xbf16, #tpu.memory_space<vmem>>, %arg2: memref<32x32xbf16, #tpu.memory_space<vmem>>, %arg3: memref<1x32xf32, #tpu.memory_space<vmem>>, %arg4: memref<16x32xf32, #tpu.memory_space<vmem>>, %arg5: memref<16x32xf32, #tpu.memory_space<vmem>>) attributes {dimension_semantics = [#tpu.dimension_semantics<parallel>], iteration_bounds = array<i64: 1>, scalar_prefetch = 0 : i64, scratch_operands = 0 : i64, tpu.core_type = #tpu.core_type<tc>, window_params = [{transform_indices = @transform_0, window_bounds = array<i64: 16, 32>}, {pipeline_mode = #tpu.pipeline_mode<synchronous>, transform_indices = @transform_1, window_bounds = array<i64: 32, 32>}, {pipeline_mode = #tpu.pipeline_mode<synchronous>, transform_indices = @transform_2, window_bounds = array<i64: 1, 32>}, {transform_indices = @transform_3, window_bounds = array<i64: 16, 32>}, {transform_indices = @transform_4, window_bounds = array<i64: 16, 32>}]} {
    %c0 = arith.constant 0 : index
    %c0_0 = arith.constant 0 : index
    %0 = vector.load %arg1[%c0, %c0_0] : memref<16x32xbf16, #tpu.memory_space<vmem>>, vector<16x32xbf16>
    %c0_1 = arith.constant 0 : index
    %c0_2 = arith.constant 0 : index
    %1 = vector.load %arg2[%c0_1, %c0_2] : memref<32x32xbf16, #tpu.memory_space<vmem>>, vector<32x32xbf16>
    %cst = arith.constant dense<0.000000e+00> : vector<16x32xf32>
    %2 = tpu.matmul %0, %1, %cst {dimension_numbers = #tpu.dot_dimension_numbers<[1], [0], [0], [1], [0, 0, 1, 1], [], []>} : vector<16x32xbf16>, vector<32x32xbf16>, vector<16x32xf32> -> vector<16x32xf32>
    %c0_3 = arith.constant 0 : index
    %c0_4 = arith.constant 0 : index
    %3 = vector.load %arg3[%c0_3, %c0_4] : memref<1x32xf32, #tpu.memory_space<vmem>>, vector<1x32xf32>
    %4 = vector.broadcast %3 : vector<1x32xf32> to vector<16x32xf32>
    %5 = arith.addf %2, %4 : vector<16x32xf32>
    %c0_5 = arith.constant 0 : index
    %c0_6 = arith.constant 0 : index
    %6 = vector.load %arg4[%c0_5, %c0_6] : memref<16x32xf32, #tpu.memory_space<vmem>>, vector<16x32xf32>
    %7 = arith.addf %6, %5 : vector<16x32xf32>
    %c0_7 = arith.constant 0 : index
    %c0_8 = arith.constant 0 : index
    %8 = vector.load %arg5[%c0_7, %c0_8] : memref<16x32xf32, #tpu.memory_space<vmem>>, vector<16x32xf32>
    tpu.vector_store %arg5[%c0_7, %c0_8], %7 {strides = array<i32>} : memref<16x32xf32, #tpu.memory_space<vmem>>, vector<16x32xf32>,
    return
  }
  func.func @transform_0(%arg0: i32) -> (i32, i32) {
    %c0_i32 = arith.constant 0 : i32
    %c0_i32_0 = arith.constant 0 : i32
    return %arg0, %c0_i32 : i32, i32
  }
  func.func @transform_1(%arg0: i32) -> (i32, i32) {
    %c0_i32 = arith.constant 0 : i32
    %c0_i32_0 = arith.constant 0 : i32
    %c0_i32_1 = arith.constant 0 : i32
    return %c0_i32, %c0_i32_0 : i32, i32
  }
  func.func @transform_2(%arg0: i32) -> (i32, i32) {
    %c0_i32 = arith.constant 0 : i32
    %c0_i32_0 = arith.constant 0 : i32
    %c0_i32_1 = arith.constant 0 : i32
    return %c0_i32, %c0_i32_0 : i32, i32
  }
  func.func @transform_3(%arg0: i32) -> (i32, i32) {
    %c0_i32 = arith.constant 0 : i32
    %c0_i32_0 = arith.constant 0 : i32
    return %arg0, %c0_i32 : i32, i32
  }
  func.func @transform_4(%arg0: i32) -> (i32, i32) {
    %c0_i32 = arith.constant 0 : i32
    %c0_i32_0 = arith.constant 0 : i32
    return %arg0, %c0_i32 : i32, i32
  }
}

module attributes {stable_mosaic.version = 11 : i64} {
  func.func @ln_matmul_kernel(%arg0: i32, %arg1: i32, %arg2: memref<16x32xf32, #tpu.memory_space<vmem>>, %arg3: memref<1x32xf32, #tpu.memory_space<vmem>>, %arg4: memref<1x32xf32, #tpu.memory_space<vmem>>, %arg5: memref<32x128xbf16, #tpu.memory_space<vmem>>, %arg6: memref<1x128xf32, #tpu.memory_space<vmem>>, %arg7: memref<16x128xbf16, #tpu.memory_space<vmem>>) attributes {dimension_semantics = [#tpu.dimension_semantics<parallel>, #tpu.dimension_semantics<parallel>], iteration_bounds = array<i64: 1, 1>, scalar_prefetch = 0 : i64, scratch_operands = 0 : i64, tpu.core_type = #tpu.core_type<tc>, window_params = [{transform_indices = @transform_0, window_bounds = array<i64: 16, 32>}, {pipeline_mode = #tpu.pipeline_mode<synchronous>, transform_indices = @transform_1, window_bounds = array<i64: 1, 32>}, {pipeline_mode = #tpu.pipeline_mode<synchronous>, transform_indices = @transform_2, window_bounds = array<i64: 1, 32>}, {transform_indices = @transform_3, window_bounds = array<i64: 32, 128>}, {transform_indices = @transform_4, window_bounds = array<i64: 1, 128>}, {transform_indices = @transform_5, window_bounds = array<i64: 16, 128>}]} {
    %c0 = arith.constant 0 : index
    %c0_0 = arith.constant 0 : index
    %0 = vector.load %arg2[%c0, %c0_0] : memref<16x32xf32, #tpu.memory_space<vmem>>, vector<16x32xf32>
    %c0_1 = arith.constant 0 : index
    %c0_2 = arith.constant 0 : index
    %1 = vector.load %arg3[%c0_1, %c0_2] : memref<1x32xf32, #tpu.memory_space<vmem>>, vector<1x32xf32>
    %c0_3 = arith.constant 0 : index
    %c0_4 = arith.constant 0 : index
    %2 = vector.load %arg4[%c0_3, %c0_4] : memref<1x32xf32, #tpu.memory_space<vmem>>, vector<1x32xf32>
    %cst = arith.constant dense<0.000000e+00> : vector<16xf32>
    %3 = vector.multi_reduction <add>, %0, %cst [1] : vector<16x32xf32> to vector<16xf32>
    %4 = vector.shape_cast %3 : vector<16xf32> to vector<16x1xf32>
    %cst_5 = arith.constant 3.200000e+01 : f32
    %5 = vector.broadcast %cst_5 : f32 to vector<16x1xf32>
    %6 = arith.divf %4, %5 : vector<16x1xf32>
    %7 = arith.mulf %0, %0 : vector<16x32xf32>
    %cst_6 = arith.constant dense<0.000000e+00> : vector<16xf32>
    %8 = vector.multi_reduction <add>, %7, %cst_6 [1] : vector<16x32xf32> to vector<16xf32>
    %9 = vector.shape_cast %8 : vector<16xf32> to vector<16x1xf32>
    %cst_7 = arith.constant 3.200000e+01 : f32
    %10 = vector.broadcast %cst_7 : f32 to vector<16x1xf32>
    %11 = arith.divf %9, %10 : vector<16x1xf32>
    %12 = arith.mulf %6, %6 : vector<16x1xf32>
    %13 = arith.subf %11, %12 : vector<16x1xf32>
    %cst_8 = arith.constant 9.99999974E-6 : f32
    %14 = vector.broadcast %cst_8 : f32 to vector<16x1xf32>
    %15 = arith.addf %13, %14 : vector<16x1xf32>
    %16 = math.rsqrt %15 : vector<16x1xf32>
    %17 = vector.broadcast %6 : vector<16x1xf32> to vector<16x32xf32>
    %18 = arith.subf %0, %17 : vector<16x32xf32>
    %19 = vector.broadcast %16 : vector<16x1xf32> to vector<16x32xf32>
    %20 = arith.mulf %18, %19 : vector<16x32xf32>
    %21 = vector.broadcast %1 : vector<1x32xf32> to vector<16x32xf32>
    %22 = arith.mulf %20, %21 : vector<16x32xf32>
    %23 = vector.broadcast %2 : vector<1x32xf32> to vector<16x32xf32>
    %24 = arith.addf %22, %23 : vector<16x32xf32>
    %25 = arith.truncf %24 : vector<16x32xf32> to vector<16x32xbf16>
    %c0_9 = arith.constant 0 : index
    %c0_10 = arith.constant 0 : index
    %26 = vector.load %arg5[%c0_9, %c0_10] : memref<32x128xbf16, #tpu.memory_space<vmem>>, vector<32x128xbf16>
    %cst_11 = arith.constant dense<0.000000e+00> : vector<16x128xf32>
    %27 = tpu.matmul %25, %26, %cst_11 {dimension_numbers = #tpu.dot_dimension_numbers<[1], [0], [0], [1], [0, 0, 1, 1], [], []>} : vector<16x32xbf16>, vector<32x128xbf16>, vector<16x128xf32> -> vector<16x128xf32>
    %c0_12 = arith.constant 0 : index
    %c0_13 = arith.constant 0 : index
    %28 = vector.load %arg6[%c0_12, %c0_13] : memref<1x128xf32, #tpu.memory_space<vmem>>, vector<1x128xf32>
    %29 = vector.broadcast %28 : vector<1x128xf32> to vector<16x128xf32>
    %30 = arith.addf %27, %29 : vector<16x128xf32>
    %cst_14 = arith.constant 5.000000e-01 : f32
    %31 = vector.broadcast %cst_14 : f32 to vector<16x128xf32>
    %32 = arith.mulf %31, %30 : vector<16x128xf32>
    %cst_15 = arith.constant 4.471500e-02 : f32
    %33 = vector.broadcast %cst_15 : f32 to vector<16x128xf32>
    %34 = arith.mulf %33, %30 : vector<16x128xf32>
    %35 = arith.mulf %34, %30 : vector<16x128xf32>
    %36 = arith.mulf %35, %30 : vector<16x128xf32>
    %37 = arith.addf %30, %36 : vector<16x128xf32>
    %cst_16 = arith.constant 0.797884583 : f32
    %38 = vector.broadcast %cst_16 : f32 to vector<16x128xf32>
    %39 = arith.mulf %38, %37 : vector<16x128xf32>
    %40 = math.tanh %39 : vector<16x128xf32>
    %cst_17 = arith.constant 1.000000e+00 : f32
    %41 = vector.broadcast %cst_17 : f32 to vector<16x128xf32>
    %42 = arith.addf %41, %40 : vector<16x128xf32>
    %43 = arith.mulf %32, %42 : vector<16x128xf32>
    %44 = arith.truncf %43 : vector<16x128xf32> to vector<16x128xbf16>
    %c0_18 = arith.constant 0 : index
    %c0_19 = arith.constant 0 : index
    %45 = vector.load %arg7[%c0_18, %c0_19] : memref<16x128xbf16, #tpu.memory_space<vmem>>, vector<16x128xbf16>
    tpu.vector_store %arg7[%c0_18, %c0_19], %44 {strides = array<i32>} : memref<16x128xbf16, #tpu.memory_space<vmem>>, vector<16x128xbf16>,
    return
  }
  func.func @transform_0(%arg0: i32, %arg1: i32) -> (i32, i32) {
    %c0_i32 = arith.constant 0 : i32
    %c0_i32_0 = arith.constant 0 : i32
    return %arg0, %c0_i32 : i32, i32
  }
  func.func @transform_1(%arg0: i32, %arg1: i32) -> (i32, i32) {
    %c0_i32 = arith.constant 0 : i32
    %c0_i32_0 = arith.constant 0 : i32
    %c0_i32_1 = arith.constant 0 : i32
    return %c0_i32, %c0_i32_0 : i32, i32
  }
  func.func @transform_2(%arg0: i32, %arg1: i32) -> (i32, i32) {
    %c0_i32 = arith.constant 0 : i32
    %c0_i32_0 = arith.constant 0 : i32
    %c0_i32_1 = arith.constant 0 : i32
    return %c0_i32, %c0_i32_0 : i32, i32
  }
  func.func @transform_3(%arg0: i32, %arg1: i32) -> (i32, i32) {
    %c0_i32 = arith.constant 0 : i32
    %c0_i32_0 = arith.constant 0 : i32
    return %c0_i32, %arg1 : i32, i32
  }
  func.func @transform_4(%arg0: i32, %arg1: i32) -> (i32, i32) {
    %c0_i32 = arith.constant 0 : i32
    %c0_i32_0 = arith.constant 0 : i32
    return %c0_i32, %arg1 : i32, i32
  }
  func.func @transform_5(%arg0: i32, %arg1: i32) -> (i32, i32) {
    %c0_i32 = arith.constant 0 : i32
    return %arg0, %arg1 : i32, i32
  }
}

module attributes {stable_mosaic.version = 11 : i64} {
  func.func @lm_head_kernel(%arg0: i32, %arg1: i32, %arg2: memref<16x32xf32, #tpu.memory_space<vmem>>, %arg3: memref<1x32xf32, #tpu.memory_space<vmem>>, %arg4: memref<1x32xf32, #tpu.memory_space<vmem>>, %arg5: memref<64x32xbf16, #tpu.memory_space<vmem>>, %arg6: memref<16x64xf32, #tpu.memory_space<vmem>>) attributes {dimension_semantics = [#tpu.dimension_semantics<parallel>, #tpu.dimension_semantics<parallel>], iteration_bounds = array<i64: 1, 1>, scalar_prefetch = 0 : i64, scratch_operands = 0 : i64, tpu.core_type = #tpu.core_type<tc>, window_params = [{transform_indices = @transform_0, window_bounds = array<i64: 16, 32>}, {pipeline_mode = #tpu.pipeline_mode<synchronous>, transform_indices = @transform_1, window_bounds = array<i64: 1, 32>}, {pipeline_mode = #tpu.pipeline_mode<synchronous>, transform_indices = @transform_2, window_bounds = array<i64: 1, 32>}, {transform_indices = @transform_3, window_bounds = array<i64: 64, 32>}, {transform_indices = @transform_4, window_bounds = array<i64: 16, 64>}]} {
    %c0 = arith.constant 0 : index
    %c0_0 = arith.constant 0 : index
    %0 = vector.load %arg2[%c0, %c0_0] : memref<16x32xf32, #tpu.memory_space<vmem>>, vector<16x32xf32>
    %c0_1 = arith.constant 0 : index
    %c0_2 = arith.constant 0 : index
    %1 = vector.load %arg3[%c0_1, %c0_2] : memref<1x32xf32, #tpu.memory_space<vmem>>, vector<1x32xf32>
    %c0_3 = arith.constant 0 : index
    %c0_4 = arith.constant 0 : index
    %2 = vector.load %arg4[%c0_3, %c0_4] : memref<1x32xf32, #tpu.memory_space<vmem>>, vector<1x32xf32>
    %cst = arith.constant dense<0.000000e+00> : vector<16xf32>
    %3 = vector.multi_reduction <add>, %0, %cst [1] : vector<16x32xf32> to vector<16xf32>
    %4 = vector.shape_cast %3 : vector<16xf32> to vector<16x1xf32>
    %cst_5 = arith.constant 3.200000e+01 : f32
    %5 = vector.broadcast %cst_5 : f32 to vector<16x1xf32>
    %6 = arith.divf %4, %5 : vector<16x1xf32>
    %7 = arith.mulf %0, %0 : vector<16x32xf32>
    %cst_6 = arith.constant dense<0.000000e+00> : vector<16xf32>
    %8 = vector.multi_reduction <add>, %7, %cst_6 [1] : vector<16x32xf32> to vector<16xf32>
    %9 = vector.shape_cast %8 : vector<16xf32> to vector<16x1xf32>
    %cst_7 = arith.constant 3.200000e+01 : f32
    %10 = vector.broadcast %cst_7 : f32 to vector<16x1xf32>
    %11 = arith.divf %9, %10 : vector<16x1xf32>
    %12 = arith.mulf %6, %6 : vector<16x1xf32>
    %13 = arith.subf %11, %12 : vector<16x1xf32>
    %cst_8 = arith.constant 9.99999974E-6 : f32
    %14 = vector.broadcast %cst_8 : f32 to vector<16x1xf32>
    %15 = arith.addf %13, %14 : vector<16x1xf32>
    %16 = math.rsqrt %15 : vector<16x1xf32>
    %17 = vector.broadcast %6 : vector<16x1xf32> to vector<16x32xf32>
    %18 = arith.subf %0, %17 : vector<16x32xf32>
    %19 = vector.broadcast %16 : vector<16x1xf32> to vector<16x32xf32>
    %20 = arith.mulf %18, %19 : vector<16x32xf32>
    %21 = vector.broadcast %1 : vector<1x32xf32> to vector<16x32xf32>
    %22 = arith.mulf %20, %21 : vector<16x32xf32>
    %23 = vector.broadcast %2 : vector<1x32xf32> to vector<16x32xf32>
    %24 = arith.addf %22, %23 : vector<16x32xf32>
    %25 = arith.truncf %24 : vector<16x32xf32> to vector<16x32xbf16>
    %c0_9 = arith.constant 0 : index
    %c0_10 = arith.constant 0 : index
    %26 = vector.load %arg5[%c0_9, %c0_10] : memref<64x32xbf16, #tpu.memory_space<vmem>>, vector<64x32xbf16>
    %cst_11 = arith.constant dense<0.000000e+00> : vector<16x64xf32>
    %27 = tpu.matmul %25, %26, %cst_11 {dimension_numbers = #tpu.dot_dimension_numbers<[1], [1], [0], [0], [0, 0, 1, 0], [], []>} : vector<16x32xbf16>, vector<64x32xbf16>, vector<16x64xf32> -> vector<16x64xf32>
    %c0_12 = arith.constant 0 : index
    %c0_13 = arith.constant 0 : index
    %28 = vector.load %arg6[%c0_12, %c0_13] : memref<16x64xf32, #tpu.memory_space<vmem>>, vector<16x64xf32>
    tpu.vector_store %arg6[%c0_12, %c0_13], %27 {strides = array<i32>} : memref<16x64xf32, #tpu.memory_space<vmem>>, vector<16x64xf32>,
    return
  }
  func.func @transform_0(%arg0: i32, %arg1: i32) -> (i32, i32) {
    %c0_i32 = arith.constant 0 : i32
    %c0_i32_0 = arith.constant 0 : i32
    return %arg0, %c0_i32 : i32, i32
  }
  func.func @transform_1(%arg0: i32, %arg1: i32) -> (i32, i32) {
    %c0_i32 = arith.constant 0 : i32
    %c0_i32_0 = arith.constant 0 : i32
    %c0_i32_1 = arith.constant 0 : i32
    return %c0_i32, %c0_i32_0 : i32, i32
  }
  func.func @transform_2(%arg0: i32, %arg1: i32) -> (i32, i32) {
    %c0_i32 = arith.constant 0 : i32
    %c0_i32_0 = arith.constant 0 : i32
    %c0_i32_1 = arith.constant 0 : i32
    return %c0_i32, %c0_i32_0 : i32, i32
  }
  func.func @transform_3(%arg0: i32, %arg1: i32) -> (i32, i32) {
    %c0_i32 = arith.constant 0 : i32
    %c0_i32_0 = arith.constant 0 : i32
    return %arg1, %c0_i32 : i32, i32
  }
  func.func @transform_4(%arg0: i32, %arg1: i32) -> (i32, i32) {
    %c0_i32 = arith.constant 0 : i32
    return %arg0, %arg1 : i32, i32
  }
}

module attributes {stable_mosaic.version = 11 : i64} {
  func.func @matmul_residual_kernel(%arg0: i32, %arg1: memref<16x128xbf16, #tpu.memory_space<vmem>>, %arg2: memref<128x32xbf16, #tpu.memory_space<vmem>>, %arg3: memref<1x32xf32, #tpu.memory_space<vmem>>, %arg4: memref<16x32xf32, #tpu.memory_space<vmem>>, %arg5: memref<16x32xf32, #tpu.memory_space<vmem>>) attributes {dimension_semantics = [#tpu.dimension_semantics<parallel>], iteration_bounds = array<i64: 1>, scalar_prefetch = 0 : i64, scratch_operands = 0 : i64, tpu.core_type = #tpu.core_type<tc>, window_params = [{transform_indices = @transform_0, window_bounds = array<i64: 16, 128>}, {pipeline_mode = #tpu.pipeline_mode<synchronous>, transform_indices = @transform_1, window_bounds = array<i64: 128, 32>}, {pipeline_mode = #tpu.pipeline_mode<synchronous>, transform_indices = @transform_2, window_bounds = array<i64: 1, 32>}, {transform_indices = @transform_3, window_bounds = array<i64: 16, 32>}, {transform_indices = @transform_4, window_bounds = array<i64: 16, 32>}]} {
    %c0 = arith.constant 0 : index
    %c0_0 = arith.constant 0 : index
    %0 = vector.load %arg1[%c0, %c0_0] : memref<16x128xbf16, #tpu.memory_space<vmem>>, vector<16x128xbf16>
    %c0_1 = arith.constant 0 : index
    %c0_2 = arith.constant 0 : index
    %1 = vector.load %arg2[%c0_1, %c0_2] : memref<128x32xbf16, #tpu.memory_space<vmem>>, vector<128x32xbf16>
    %cst = arith.constant dense<0.000000e+00> : vector<16x32xf32>
    %2 = tpu.matmul %0, %1, %cst {dimension_numbers = #tpu.dot_dimension_numbers<[1], [0], [0], [1], [0, 0, 1, 1], [], []>} : vector<16x128xbf16>, vector<128x32xbf16>, vector<16x32xf32> -> vector<16x32xf32>
    %c0_3 = arith.constant 0 : index
    %c0_4 = arith.constant 0 : index
    %3 = vector.load %arg3[%c0_3, %c0_4] : memref<1x32xf32, #tpu.memory_space<vmem>>, vector<1x32xf32>
    %4 = vector.broadcast %3 : vector<1x32xf32> to vector<16x32xf32>
    %5 = arith.addf %2, %4 : vector<16x32xf32>
    %c0_5 = arith.constant 0 : index
    %c0_6 = arith.constant 0 : index
    %6 = vector.load %arg4[%c0_5, %c0_6] : memref<16x32xf32, #tpu.memory_space<vmem>>, vector<16x32xf32>
    %7 = arith.addf %6, %5 : vector<16x32xf32>
    %c0_7 = arith.constant 0 : index
    %c0_8 = arith.constant 0 : index
    %8 = vector.load %arg5[%c0_7, %c0_8] : memref<16x32xf32, #tpu.memory_space<vmem>>, vector<16x32xf32>
    tpu.vector_store %arg5[%c0_7, %c0_8], %7 {strides = array<i32>} : memref<16x32xf32, #tpu.memory_space<vmem>>, vector<16x32xf32>,
    return
  }
  func.func @transform_0(%arg0: i32) -> (i32, i32) {
    %c0_i32 = arith.constant 0 : i32
    %c0_i32_0 = arith.constant 0 : i32
    return %arg0, %c0_i32 : i32, i32
  }
  func.func @transform_1(%arg0: i32) -> (i32, i32) {
    %c0_i32 = arith.constant 0 : i32
    %c0_i32_0 = arith.constant 0 : i32
    %c0_i32_1 = arith.constant 0 : i32
    return %c0_i32, %c0_i32_0 : i32, i32
  }
  func.func @transform_2(%arg0: i32) -> (i32, i32) {
    %c0_i32 = arith.constant 0 : i32
    %c0_i32_0 = arith.constant 0 : i32
    %c0_i32_1 = arith.constant 0 : i32
    return %c0_i32, %c0_i32_0 : i32, i32
  }
  func.func @transform_3(%arg0: i32) -> (i32, i32) {
    %c0_i32 = arith.constant 0 : i32
    %c0_i32_0 = arith.constant 0 : i32
    return %arg0, %c0_i32 : i32, i32
  }
  func.func @transform_4(%arg0: i32) -> (i32, i32) {
    %c0_i32 = arith.constant 0 : i32
    %c0_i32_0 = arith.constant 0 : i32
    return %arg0, %c0_i32 : i32, i32
  }
}

</mosaic_0001>

<bundles_post_ra>
// kernel: _lambda_.13
= control target key start
LH: loop header
LB: loop body
LE: loop exit
PB: predicated region body
PF: predicated region fallthrough
CT: control target
= control target key end

     0   :  { %v124_v0 = vmov 0.0   ;;  %vm125_vm0 = vmmov 0   ;;  %vm48_vm1 = vcmask 261120   ;;  %s178_s1 = inlined_call_operand.vmem [shape: bf16[32,32], index: 1, kind: input, shape index: {}]   ;;  %s179_s0 = inlined_call_operand.vmem [shape: bf16[16,32], index: 0, kind: input, shape index: {}]   ;;  %s180_s2 = inlined_call_operand.vmem [shape: f32[1,32], index: 2, kind: input, shape index: {}]   ;;  %s181_s3 = inlined_call_operand.vmem [shape: f32[16,32], index: 3, kind: input, shape index: {}]   ;;  %s182_s4 = inlined_call_operand.vmem [shape: f32[16,32], index: 4, kind: output, shape index: {}]  }
   0x1   :  { %111 = vmatprep.subr.bf16.mxu0 %v124_v0  ;;  %v121_v1 = vld [vmem:[%s178_s1] sm:$0xff]   ;;  %115 = vmatprep.mubr.msk.bf16.mxu0 %vm125_vm0, %v124_v0  ;;  %v122_v2 = vld [vmem:[%s178_s1 + $0x8] sm:$0xff]  }
   0x2   :  { %112 = vmatpush3.bf16.msra.mxu0 %v121_v1  ;;  %v123_v3 = vld [vmem:[%s179_s0] sm:$0xff]   ;;  %v94_v10 = vld [vmem:[%s181_s3 + $0x8] sm:$0xff] }
   0x3   :  { %113 = vmatprep.subr.bf16.mxu0 %v124_v0  ;;  %v103_v4 = vld [vmem:[%s180_s2] ss:$0 sm:$0xff] }
   0x4   :  { %v93_v6 = vld [vmem:[%s181_s3] sm:$0xff] }
   0x6   :  { %114 = vmatpush3.bf16.msra.mxu0 %v122_v2 }
   0x9   :  { %116 = vmatmul.mubr.msk.bf16.vlgmr.msra.gmra.mrb[0].mxu0 %vm48_vm1, %v123_v3 }
  0xdc   :  { %v86_v5 = vpop.f32.mrb[0].mxu0 }
  0xdd   :  { %v87_v7 = vadd.f32 %v103_v4, %v86_v5  ;;  %v117_v8 = vpop.f32.mrb[1].mxu0 }
  0xde   :  { %v89_v9 = vpop.f32.mrb[2].mxu0 }
  0xdf   :  { %v95_v11 = vadd.f32 %v93_v6, %v87_v7  ;;  %v90_v12 = vadd.f32 %v103_v4, %v89_v9  ;;  %v118_v13 = vpop.f32.mrb[3].mxu0 }
  0xe1   :  { %97 = vst.msk [vmem:[%s182_s4] sm:$0xff] %vm48_vm1, %v95_v11  ;;  %v96_v14 = vadd.f32 %v94_v10, %v90_v12 }
  0xe3   :  { %98 = vst.msk [vmem:[%s182_s4 + $0x8] sm:$0xff] %vm48_vm1, %v96_v14 }

// kernel: _lambda_.12
= control target key start
LH: loop header
LB: loop body
LE: loop exit
PB: predicated region body
PF: predicated region fallthrough
CT: control target
= control target key end

     0   :  { %s721_s12 = smov 0   ;;  %s723_s13 = smov 0   ;;  %s776_s0 = inlined_call_operand.vmem [shape: bf16[2,2,8,16], index: 0, kind: input, shape index: {}]   ;;  %s777_s1 = inlined_call_operand.vmem [shape: bf16[2,2,8,16], index: 1, kind: input, shape index: {}]   ;;  %s778_s2 = inlined_call_operand.vmem [shape: bf16[2,2,8,16], index: 2, kind: input, shape index: {}]   ;;  %s779_s3 = inlined_call_operand.vmem [shape: bf16[2,2,8,16], index: 3, kind: output, shape index: {}]  }
   0x1   :  { %s725_s14 = smov 0  }
   0x2 LB: > { %s25_s15 = sadd.s32 1, %s693_s13  ;;  %p590_p0 = scmp.ge.s32.totalorder %s697_s14, 1  ;;  %s697_s14 = sphi %s725_s14, %s13_s14   ;;  %s693_s13 = sphi %s723_s13, %s781_s13   ;;  %s689_s12 = sphi %s721_s12, %s780_s12  }
   0x3   : > { %p27_p1 = scmp.ge.s32.totalorder %s25_s15, 2  ;;  %p176_p2 = scmp.lt.s32.totalorder %s697_s14, 3 }
   0x5   : > { %s783_s15 = smov (%p27_p1, %s25_s15), 0  ;;  %p177_p3 = pnand %p590_p0, %p176_p2 }
   0x6   : > { %p216_p4 = scmp.lt.s32.totalorder (!%p177_p3), %s689_s12, 1  ;;  %v699_v0 = vmov (!%p177_p3), 0.0   ;;  %vm700_vm0 = vmmov (!%p177_p3), 0   ;;  %vm249_vm1 = vcmask (!%p177_p3), 130048   ;;  %v345_v7 = vlaneseq (!%p177_p3) }
   0x7   : > { %180 = sbr.rel (%p177_p3) target bundleno = 776 (0x308), region = 32  ;;  %617 = vmatprep.subr.bf16.mxu0 (!%p177_p3), %v699_v0  ;;  %623 = vmatprep.subr.bf16.mxu1 (!%p177_p3), %v699_v0  ;;  %vm356_vm3 = vcmask (!%p177_p3), 64512   ;;  %vm384_vm4 = vcmask (!%p177_p3), 1043456   ;;  %vm476_vm5 = vcmask (!%p177_p3), 125952  }
   0x8   : > { %619 = vmatprep.mubr.msk.bf16.mxu0 (!%p177_p3), %vm700_vm0, %v699_v0  ;;  %625 = vmatprep.mubr.msk.bf16.mxu1 (!%p177_p3), %vm700_vm0, %v699_v0  ;;  %v346_v8 = vshrl.u32 (!%p177_p3), %v345_v7, 7  ;;  %v350_v9 = vand.u32 (!%p177_p3), 127, %v345_v7 }
   0xa   : > { %vm351_vm2 = vcmp.ge.s32.totalorder (!%p177_p3), %v346_v8, %v350_v9 }
   0xe   : > { %s785_s12 = smov (!%p216_p4, %s689_s12), 1 }
   0xf   : > { %s741_s16 = sshll.u32 %s785_s12, 3 }
  0x10   : > { %s228_s19 = scalar_lea.vmem %s777_s1, %s741_s16  ;;  %s223_s22 = scalar_lea.vmem %s776_s0, %s741_s16 }
  0x11   : > { %v245_v1 = vld [vmem:[%s228_s19] sm:$0xf]  ;;  %v246_v2 = vld [vmem:[%s228_s19 + $0x4] sm:$0xf]  ;;  %s233_s25 = scalar_lea.vmem %s778_s2, %s741_s16  ;;  %s241_s28 = scalar_lea.vmem %s779_s3, %s741_s16 }
  0x12   : > { %v254_v3 = vsel %vm249_vm1, %v245_v1, 0  ;;  %v300_v4 = vsel %vm249_vm1, %v246_v2, 0  ;;  %v243_v5 = vld [vmem:[%s223_s22] sm:$0xf]  ;;  %v244_v6 = vld [vmem:[%s223_s22 + $0x4] sm:$0xf] }
  0x13   : > { %618 = vmatpush3.bf16.xpose.msra.mxu0 %v254_v3  ;;  %624 = vmatpush3.bf16.xpose.msra.mxu1 %v300_v4  ;;  %v247_v34 = vld [vmem:[%s233_s25] sm:$0xf]  ;;  %v248_v36 = vld [vmem:[%s233_s25 + $0x4] sm:$0xf] }
  0x14   : > { %629 = vmatprep.subr.bf16.mxu0 %v699_v0  ;;  %635 = vmatprep.subr.bf16.mxu1 %v699_v0  ;;  %v386_v35 = vsel %vm384_vm4, %v247_v34, 0  ;;  %v432_v37 = vsel %vm384_vm4, %v248_v36, 0 }
  0x1a   : > { %620 = vmatmul.mubr.msk.bf16.vlgmr.msra.gmra.mrb[0].mxu0 %vm249_vm1, %v243_v5  ;;  %626 = vmatmul.mubr.msk.bf16.vlgmr.msra.gmra.mrb[0].mxu1 %vm249_vm1, %v244_v6 }
  0x1b   : > { %631 = vmatprep.mubr.msk.bf16.mxu0 %vm700_vm0, %v699_v0  ;;  %637 = vmatprep.mubr.msk.bf16.mxu1 %vm700_vm0, %v699_v0 }
  0x1c   : > { %630 = vmatpush3.bf16.msra.mxu0 %v386_v35  ;;  %636 = vmatpush3.bf16.msra.mxu1 %v432_v37 }
  0xed   : > { %v290_v10 = vpop.f32.mrb[0].mxu0  ;;  %v336_v11 = vpop.f32.mrb[0].mxu1 }
  0xee   : > { %v342_v12 = vmul.f32 0.25, %v290_v10  ;;  %v621_v13 = vpop.f32.mrb[1].mxu0  ;;  %v343_v14 = vmul.f32 0.25, %v336_v11  ;;  %v627_v15 = vpop.f32.mrb[1].mxu1 }
  0xef   : > { %v293_v16 = vpop.f32.mrb[2].mxu0  ;;  %v339_v17 = vpop.f32.mrb[2].mxu1 }
  0xf0   : > { %v622_v18 = vpop.f32.mrb[3].mxu0  ;;  %v628_v19 = vpop.f32.mrb[3].mxu1  ;;  %v354_v20 = vsel %vm351_vm2, %v342_v12, -1e+30  ;;  %v355_v21 = vsel %vm351_vm2, %v343_v14, -1e+30 }
  0xf1   : > { %v357_v22 = vsel %vm356_vm3, %v354_v20, -inf  ;;  %v360_v23 = vsel %vm356_vm3, %v355_v21, -inf }
  0xf2   : > { %358 = vmax.xlane.f32.xlu0 %v357_v22 }
  0xf6   : > { %361 = vmax.xlane.f32.xlu0 %v360_v23 }
 0x17f   : > { %v359_v24 = vpop.xlane.xlu0 %358 }
 0x180   : > { %v363_v25 = vsub.f32 %v354_v20, %v359_v24 }
 0x182   : > { %v365_v26 = vmul.f32 1.442695, %v363_v25 }
 0x183   : > { %v362_v27 = vpop.xlane.xlu0 %361 }
 0x184   : > { %667 = vpow2.f32 %v365_v26  ;;  %v364_v28 = vsub.f32 %v355_v21, %v362_v27 }
 0x186   : > { %v367_v29 = vmul.f32 1.442695, %v364_v28 }
 0x188   : > { %669 = vpow2.f32 %v367_v29 }
 0x18e   : > { %v668_v30 = vpop.eup %667 }
 0x18f   : > { %v369_v31 = vsel %vm356_vm3, %v668_v30, 0.0 }
 0x190   : > { %370 = vadd.xlane.f32.xlu1 %v369_v31 }
 0x192   : > { %v670_v32 = vpop.eup %669 }
 0x193   : > { %v372_v33 = vsel %vm356_vm3, %v670_v32, 0.0 }
 0x194   : > { %373 = vadd.xlane.f32.xlu1 %v372_v33 }
 0x21d   : > { %v371_v38 = vpop.xlane.xlu1 %370 }
 0x21e   : > { %671 = vrcp.f32 %v371_v38 }
 0x221   : > { %v374_v39 = vpop.xlane.xlu1 %373 }
 0x222   : > { %673 = vrcp.f32 %v374_v39 }
 0x228   : > { %v672_v40 = vpop.eup %671 }
 0x229   : > { %v377_v41 = vmul.f32 %v672_v40, %v668_v30 }
 0x22b   : > { %v379_v42 = vpack.c.bf16 %v377_v41, %v377_v41 }
 0x22c   : > { %v674_v43 = vpop.eup %673 }
 0x22d   : > { %v378_v44 = vmul.f32 %v674_v43, %v670_v32  ;;  %632 = vmatmul.mubr.msk.bf16.vlgmr.msra.gmra.mrb[4].mxu0 %vm356_vm3, %v379_v42 }
 0x22f   : > { %v380_v45 = vpack.c.bf16 %v378_v44, %v378_v44 }
 0x231   : > { %638 = vmatmul.mubr.msk.bf16.vlgmr.msra.gmra.mrb[4].mxu1 %vm356_vm3, %v380_v45 }
 0x300   : > { %v422_v46 = vpop.f32.mrb[4].mxu0 }
 0x301   : > { %v474_v47 = vpack.c.bf16 %v422_v46, %v422_v46  ;;  %v633_v48 = vpop.f32.mrb[5].mxu0 }
 0x302   : > { %v425_v49 = vpop.f32.mrb[6].mxu0 }
 0x303   : > { %477 = vst.msk [vmem:[%s241_s28] sm:$0xf] %vm476_vm5, %v474_v47  ;;  %v634_v50 = vpop.f32.mrb[7].mxu0 }
 0x304   : > { %v468_v51 = vpop.f32.mrb[4].mxu1 }
 0x305   : > { %v475_v52 = vpack.c.bf16 %v468_v51, %v468_v51  ;;  %v639_v53 = vpop.f32.mrb[5].mxu1 }
 0x306   : > { %v471_v54 = vpop.f32.mrb[6].mxu1 }
 0x307   : > { %478 = vst.msk [vmem:[%s241_s28 + $0x4] sm:$0xf] %vm476_vm5, %v475_v52  ;;  %v640_v55 = vpop.f32.mrb[7].mxu1 }
 0x308 PF: > { %s13_s14 = sadd.s32 1, %s697_s14   ;;  %s780_s12 = smov %s693_s13 }
 0x309   : > { %p10_p5 = scmp.ge.s32.totalorder %s13_s14, 4   ;;  %s781_s13 = smov %s783_s15 }
 0x30b   :  { %12 = sbr.rel (!%p10_p5) target bundleno = 2 (0x2), region = 68 }

// kernel: _lambda_.11
= control target key start
LH: loop header
LB: loop body
LE: loop exit
PB: predicated region body
PF: predicated region fallthrough
CT: control target
= control target key end

     0   :  { %vm25_vm0 = vcmask 261120   ;;  %v185_v8 = vmov 0.0   ;;  %vm186_vm1 = vmmov 0   ;;  %vm149_vm2 = vcmask 781312   ;;  %s249_s0 = inlined_call_operand.vmem [shape: f32[16,32], index: 0, kind: input, shape index: {}]   ;;  %s250_s3 = inlined_call_operand.vmem [shape: bf16[32,96], index: 3, kind: input, shape index: {}]   ;;  %s251_s1 = inlined_call_operand.vmem [shape: f32[1,32], index: 1, kind: input, shape index: {}]   ;;  %s252_s2 = inlined_call_operand.vmem [shape: f32[1,32], index: 2, kind: input, shape index: {}]   ;;  %s253_s4 = inlined_call_operand.vmem [shape: f32[1,96], index: 4, kind: input, shape index: {}]   ;;  %s254_s5 = inlined_call_operand.vmem [shape: bf16[16,96], index: 5, kind: output, shape index: {}]  }
   0x1   :  { %v21_v0 = vld [vmem:[%s249_s0] sm:$0xff]  ;;  %v22_v1 = vld [vmem:[%s249_s0 + $0x8] sm:$0xff]  ;;  %169 = vmatprep.subr.bf16.mxu0 %v185_v8  ;;  %173 = vmatprep.mubr.msk.bf16.mxu0 %vm186_vm1, %v185_v8 }
   0x2   :  { %v26_v2 = vsel %vm25_vm0, %v21_v0, 0.0  ;;  %v35_v3 = vmul.f32 %v21_v0, %v21_v0  ;;  %v36_v4 = vmul.f32 %v22_v1, %v22_v1  ;;  %v29_v6 = vsel %vm25_vm0, %v22_v1, 0.0  ;;  %v179_v9 = vld [vmem:[%s250_s3] sm:$0xff]   ;;  %v180_v10 = vld [vmem:[%s250_s3 + $0x8] sm:$0xff]  }
   0x3   :  { %27 = vadd.xlane.f32.xlu0 %v26_v2  ;;  %170 = vmatpush3.bf16.msra.mxu0 %v179_v9  ;;  %v156_v28 = vld [vmem:[%s251_s1] ss:$0 sm:$0xff] }
   0x4   :  { %v37_v5 = vsel %vm25_vm0, %v35_v3, 0.0  ;;  %v40_v7 = vsel %vm25_vm0, %v36_v4, 0.0  ;;  %171 = vmatprep.subr.bf16.mxu0 %v185_v8  ;;  %v157_v33 = vld [vmem:[%s252_s2] ss:$0 sm:$0xff] }
   0x5   :  { %38 = vadd.xlane.f32.xlu1 %v37_v5  ;;  %v158_v38 = vld [vmem:[%s253_s4] ss:$0 sm:$0xff] }
   0x7   :  { %30 = vadd.xlane.f32.xlu0 %v29_v6  ;;  %172 = vmatpush3.bf16.msra.mxu0 %v180_v10 }
   0x9   :  { %41 = vadd.xlane.f32.xlu1 %v40_v7 }
  0x90   :  { %v28_v11 = vpop.xlane.xlu0 %27 }
  0x91   :  { %v33_v12 = vmul.f32 0.03125, %v28_v11 }
  0x92   :  { %v39_v13 = vpop.xlane.xlu1 %38 }
  0x93   :  { %v45_v14 = vmul.f32 %v33_v12, %v33_v12  ;;  %v43_v15 = vmul.f32 0.03125, %v39_v13  ;;  %v53_v25 = vsub.f32 %v21_v0, %v33_v12 }
  0x94   :  { %v31_v16 = vpop.xlane.xlu0 %30 }
  0x95   :  { %v47_v17 = vsub.f32 %v43_v15, %v45_v14  ;;  %v34_v18 = vmul.f32 0.03125, %v31_v16 }
  0x96   :  { %v42_v19 = vpop.xlane.xlu1 %41 }
  0x97   :  { %v49_v20 = vadd.f32 1e-05, %v47_v17  ;;  %v46_v21 = vmul.f32 %v34_v18, %v34_v18  ;;  %v44_v22 = vmul.f32 0.03125, %v42_v19  ;;  %v54_v29 = vsub.f32 %v22_v1, %v34_v18 }
  0x99   :  { %181 = vrsqrt.f32 %v49_v20  ;;  %v48_v23 = vsub.f32 %v44_v22, %v46_v21 }
  0x9b   :  { %v50_v24 = vadd.f32 1e-05, %v48_v23 }
  0x9d   :  { %183 = vrsqrt.f32 %v50_v24 }
  0xa3   :  { %v182_v26 = vpop.eup %181 }
  0xa4   :  { %v55_v27 = vmul.f32 %v182_v26, %v53_v25 }
  0xa6   :  { %v63_v32 = vmul.f32 %v156_v28, %v55_v27 }
  0xa7   :  { %v184_v30 = vpop.eup %183 }
  0xa8   :  { %v56_v31 = vmul.f32 %v184_v30, %v54_v29  ;;  %v71_v35 = vadd.f32 %v157_v33, %v63_v32 }
  0xaa   :  { %v64_v34 = vmul.f32 %v156_v28, %v56_v31 }
  0xac   :  { %v72_v36 = vadd.f32 %v157_v33, %v64_v34 }
  0xae   :  { %v73_v37 = vpack.c.bf16 %v72_v36, %v71_v35 }
  0xb0   :  { %174 = vmatmul.mubr.msk.bf16.vlgmr.msra.gmra.mrb[0].mxu0 %vm25_vm0, %v73_v37 }
 0x183   :  { %v134_v39 = vpop.f32.mrb[0].mxu0 }
 0x184   :  { %v135_v40 = vadd.f32 %v158_v38, %v134_v39  ;;  %v175_v41 = vpop.f32.mrb[1].mxu0 }
 0x185   :  { %v137_v42 = vpop.f32.mrb[2].mxu0 }
 0x186   :  { %v164_v43 = vpack.c.bf16 %v135_v40, %v135_v40  ;;  %v138_v44 = vadd.f32 %v158_v38, %v137_v42  ;;  %v176_v45 = vpop.f32.mrb[3].mxu0 }
 0x188   :  { %150 = vst.msk [vmem:[%s254_s5] sm:$0xf] %vm149_vm2, %v164_v43  ;;  %v165_v46 = vpack.c.bf16 %v138_v44, %v138_v44 }
 0x18a   :  { %151 = vst.msk [vmem:[%s254_s5 + $0x4] sm:$0xf] %vm149_vm2, %v165_v46 }

// kernel: _lambda_.14
= control target key start
LH: loop header
LB: loop body
LE: loop exit
PB: predicated region body
PF: predicated region fallthrough
CT: control target
= control target key end

     0   :  { %vm25_vm0 = vcmask 261120   ;;  %v211_v8 = vmov 0.0   ;;  %vm212_vm1 = vmmov 0   ;;  %s272_s0 = inlined_call_operand.vmem [shape: f32[16,32], index: 0, kind: input, shape index: {}]   ;;  %s273_s3 = inlined_call_operand.vmem [shape: bf16[32,128], index: 3, kind: input, shape index: {}]   ;;  %s274_s1 = inlined_call_operand.vmem [shape: f32[1,32], index: 1, kind: input, shape index: {}]   ;;  %s275_s2 = inlined_call_operand.vmem [shape: f32[1,32], index: 2, kind: input, shape index: {}]   ;;  %s276_s4 = inlined_call_operand.vmem [shape: f32[1,128], index: 4, kind: input, shape index: {}]   ;;  %s277_s5 = inlined_call_operand.vmem [shape: bf16[16,128], index: 5, kind: output, shape index: {}]  }
   0x1   :  { %v21_v0 = vld [vmem:[%s272_s0] sm:$0xff]  ;;  %v22_v1 = vld [vmem:[%s272_s0 + $0x8] sm:$0xff]  ;;  %191 = vmatprep.subr.bf16.mxu0 %v211_v8  ;;  %195 = vmatprep.mubr.msk.bf16.mxu0 %vm212_vm1, %v211_v8 }
   0x2   :  { %v26_v2 = vsel %vm25_vm0, %v21_v0, 0.0  ;;  %v35_v3 = vmul.f32 %v21_v0, %v21_v0  ;;  %v36_v4 = vmul.f32 %v22_v1, %v22_v1  ;;  %v29_v6 = vsel %vm25_vm0, %v22_v1, 0.0  ;;  %v201_v9 = vld [vmem:[%s273_s3] sm:$0xff]   ;;  %v202_v10 = vld [vmem:[%s273_s3 + $0x8] sm:$0xff]  }
   0x3   :  { %27 = vadd.xlane.f32.xlu0 %v26_v2  ;;  %192 = vmatpush3.bf16.msra.mxu0 %v201_v9  ;;  %v173_v28 = vld [vmem:[%s274_s1] ss:$0 sm:$0xff] }
   0x4   :  { %v37_v5 = vsel %vm25_vm0, %v35_v3, 0.0  ;;  %v40_v7 = vsel %vm25_vm0, %v36_v4, 0.0  ;;  %193 = vmatprep.subr.bf16.mxu0 %v211_v8  ;;  %v174_v33 = vld [vmem:[%s275_s2] ss:$0 sm:$0xff] }
   0x5   :  { %38 = vadd.xlane.f32.xlu1 %v37_v5  ;;  %v175_v38 = vld [vmem:[%s276_s4] ss:$0 sm:$0xff] }
   0x7   :  { %30 = vadd.xlane.f32.xlu0 %v29_v6  ;;  %194 = vmatpush3.bf16.msra.mxu0 %v202_v10 }
   0x9   :  { %41 = vadd.xlane.f32.xlu1 %v40_v7 }
  0x90   :  { %v28_v11 = vpop.xlane.xlu0 %27 }
  0x91   :  { %v33_v12 = vmul.f32 0.03125, %v28_v11 }
  0x92   :  { %v39_v13 = vpop.xlane.xlu1 %38 }
  0x93   :  { %v45_v14 = vmul.f32 %v33_v12, %v33_v12  ;;  %v43_v15 = vmul.f32 0.03125, %v39_v13  ;;  %v53_v25 = vsub.f32 %v21_v0, %v33_v12 }
  0x94   :  { %v31_v16 = vpop.xlane.xlu0 %30 }
  0x95   :  { %v47_v17 = vsub.f32 %v43_v15, %v45_v14  ;;  %v34_v18 = vmul.f32 0.03125, %v31_v16 }
  0x96   :  { %v42_v19 = vpop.xlane.xlu1 %41 }
  0x97   :  { %v49_v20 = vadd.f32 1e-05, %v47_v17  ;;  %v46_v21 = vmul.f32 %v34_v18, %v34_v18  ;;  %v44_v22 = vmul.f32 0.03125, %v42_v19  ;;  %v54_v29 = vsub.f32 %v22_v1, %v34_v18 }
  0x99   :  { %203 = vrsqrt.f32 %v49_v20  ;;  %v48_v23 = vsub.f32 %v44_v22, %v46_v21 }
  0x9b   :  { %v50_v24 = vadd.f32 1e-05, %v48_v23 }
  0x9d   :  { %205 = vrsqrt.f32 %v50_v24 }
  0xa3   :  { %v204_v26 = vpop.eup %203 }
  0xa4   :  { %v55_v27 = vmul.f32 %v204_v26, %v53_v25 }
  0xa6   :  { %v63_v32 = vmul.f32 %v173_v28, %v55_v27 }
  0xa7   :  { %v206_v30 = vpop.eup %205 }
  0xa8   :  { %v56_v31 = vmul.f32 %v206_v30, %v54_v29  ;;  %v71_v35 = vadd.f32 %v174_v33, %v63_v32 }
  0xaa   :  { %v64_v34 = vmul.f32 %v173_v28, %v56_v31 }
  0xac   :  { %v72_v36 = vadd.f32 %v174_v33, %v64_v34 }
  0xae   :  { %v73_v37 = vpack.c.bf16 %v72_v36, %v71_v35 }
  0xb0   :  { %196 = vmatmul.mubr.msk.bf16.vlgmr.msra.gmra.mrb[0].mxu0 %vm25_vm0, %v73_v37 }
 0x183   :  { %v134_v39 = vpop.f32.mrb[0].mxu0 }
 0x184   :  { %v135_v40 = vadd.f32 %v175_v38, %v134_v39  ;;  %v197_v41 = vpop.f32.mrb[1].mxu0 }
 0x185   :  { %v137_v42 = vpop.f32.mrb[2].mxu0 }
 0x186   :  { %v143_v43 = vmul.f32 0.044715, %v135_v40  ;;  %v138_v44 = vadd.f32 %v175_v38, %v137_v42  ;;  %v198_v45 = vpop.f32.mrb[3].mxu0  ;;  %v141_v58 = vmul.f32 0.5, %v135_v40 }
 0x188   :  { %v145_v46 = vmul.f32 %v143_v43, %v135_v40  ;;  %v144_v47 = vmul.f32 0.044715, %v138_v44  ;;  %v142_v59 = vmul.f32 0.5, %v138_v44 }
 0x18a   :  { %v147_v48 = vmul.f32 %v145_v46, %v135_v40  ;;  %v146_v49 = vmul.f32 %v144_v47, %v138_v44 }
 0x18c   :  { %v149_v50 = vadd.f32 %v147_v48, %v135_v40  ;;  %v148_v51 = vmul.f32 %v146_v49, %v138_v44 }
 0x18e   :  { %v151_v52 = vmul.f32 0.7978846, %v149_v50  ;;  %v150_v53 = vadd.f32 %v148_v51, %v138_v44 }
 0x190   :  { %207 = vtanh.f32 %v151_v52  ;;  %v152_v54 = vmul.f32 0.7978846, %v150_v53 }
 0x192   :  { %209 = vtanh.f32 %v152_v54 }
 0x19a   :  { %v208_v55 = vpop.eup %207 }
 0x19b   :  { %v155_v56 = vadd.f32 1.0, %v208_v55 }
 0x19c   :  { %v210_v57 = vpop.eup %209 }
 0x19d   :  { %v156_v60 = vadd.f32 1.0, %v210_v57  ;;  %v157_v61 = vmul.f32 %v155_v56, %v141_v58 }
 0x19f   :  { %v158_v62 = vmul.f32 %v156_v60, %v142_v59 }
 0x1a1   :  { %v186_v63 = vpack.c.bf16 %v158_v62, %v157_v61 }
 0x1a3   :  { %187 = vst [vmem:[%s277_s5] sm:$0xff] %v186_v63  }

// kernel: _lambda_.21
= control target key start
LH: loop header
LB: loop body
LE: loop exit
PB: predicated region body
PF: predicated region fallthrough
CT: control target
= control target key end

     0   :  { %vm23_vm0 = vcmask 261120   ;;  %v236_v5 = vmov 0.0   ;;  %s311_s0 = inlined_call_operand.vmem [shape: f32[16,32], index: 0, kind: input, shape index: {}]   ;;  %s312_s1 = inlined_call_operand.vmem [shape: f32[1,32], index: 1, kind: input, shape index: {}]   ;;  %s313_s2 = inlined_call_operand.vmem [shape: f32[1,32], index: 2, kind: input, shape index: {}]   ;;  %s314_s3 = inlined_call_operand.vmem [shape: bf16[64,32], index: 3, kind: input, shape index: {}]   ;;  %s315_s4 = inlined_call_operand.hbm [shape: f32[16,64], index: 4, kind: output, shape index: {}]  }
   0x1   :  { %v19_v0 = vld [vmem:[%s311_s0] sm:$0xff]  ;;  %v20_v1 = vld [vmem:[%s311_s0 + $0x8] sm:$0xff]  ;;  %187 = vmatprep.subr.bf16.mxu0 %v236_v5 }
   0x2   :  { %v24_v2 = vsel %vm23_vm0, %v19_v0, 0.0  ;;  %v33_v3 = vmul.f32 %v19_v0, %v19_v0  ;;  %v34_v4 = vmul.f32 %v20_v1, %v20_v1  ;;  %v27_v7 = vsel %vm23_vm0, %v20_v1, 0.0 }
   0x3   :  { %25 = vadd.xlane.f32.xlu0 %v24_v2 }
   0x4   :  { %v35_v6 = vsel %vm23_vm0, %v33_v3, 0.0 }
   0x5   :  { %36 = vadd.xlane.f32.xlu1 %v35_v6 }
   0x6   :  { %9 = vsyncpa [#allocation3], 0  ;;  %v38_v8 = vsel %vm23_vm0, %v34_v4, 0.0  ;;  %v204_v9 = vld [vmem:[%s314_s3] sm:$0xff]   ;;  %v205_v11 = vld [vmem:[%s314_s3 + $0x8] sm:$0xff]   ;;  %vm237_vm1 = vmmov 0  }
   0x7   :  { %28 = vadd.xlane.f32.xlu0 %v27_v7  ;;  %v104_v10 = vsel %vm23_vm0, %v204_v9, 0  ;;  %v107_v12 = vsel %vm23_vm0, %v205_v11, 0  ;;  %v206_v13 = vld [vmem:[%s314_s3 + $0x10] sm:$0xff]   ;;  %195 = vmatprep.mubr.msk.bf16.mxu0 %vm237_vm1, %v236_v5  ;;  %v207_v15 = vld [vmem:[%s314_s3 + $0x18] sm:$0xff]   ;;  %v175_v34 = vld [vmem:[%s312_s1] ss:$0 sm:$0xff] }
   0x8   :  { %188 = vmatpush3.bf16.xpose.msra.mxu0 %v104_v10  ;;  %v110_v14 = vsel %vm23_vm0, %v206_v13, 0  ;;  %v113_v16 = vsel %vm23_vm0, %v207_v15, 0  ;;  %v176_v39 = vld [vmem:[%s313_s2] ss:$0 sm:$0xff]  ;;  %s238_s29 = smov [#allocation2]   ;;  %vm156_vm2 = vcmask 523264  }
   0x9   :  { %39 = vadd.xlane.f32.xlu1 %v38_v8  ;;  %189 = vmatprep.subr.bf16.mxu0 %v236_v5  ;;  %s164_s30 = sshll.u32 %s238_s29, 4  ;;  %s165_s30 = int_to_ptr.vmem [resolvable:$true] %s164_s30 }
   0xa   :  { %s212_s1 = scalar_lea.vmem %s165_s30, 256  ;;  %p217_p1 = scmp.lt.s32.totalorder %s165_s30, %s165_s30 }
   0xb   :  { %p213_p0 = scmp.ne.s32.totalorder %s165_s30, %s212_s1  ;;  %p218_p2 = scmp.lt.s32.totalorder %s212_s1, %s212_s1 }
   0xd   :  { %p219_p3 = por %p218_p2, %p217_p1 }
   0xf   :  { %p220_p4 = pnand %p219_p3, %p213_p0 }
  0x10   :  { %190 = vmatpush3.bf16.xpose.msra.mxu0 %v107_v12 }
  0x11   :  { %191 = vmatprep.subr.bf16.mxu0 %v236_v5 }
  0x18   :  { %192 = vmatpush3.bf16.xpose.msra.mxu0 %v110_v14 }
  0x19   :  { %193 = vmatprep.subr.bf16.mxu0 %v236_v5 }
  0x20   :  { %194 = vmatpush3.bf16.xpose.msra.mxu0 %v113_v16 }
  0x90   :  { %v26_v17 = vpop.xlane.xlu0 %25 }
  0x91   :  { %v31_v18 = vmul.f32 0.03125, %v26_v17 }
  0x92   :  { %v37_v19 = vpop.xlane.xlu1 %36 }
  0x93   :  { %v43_v20 = vmul.f32 %v31_v18, %v31_v18  ;;  %v41_v21 = vmul.f32 0.03125, %v37_v19  ;;  %v51_v31 = vsub.f32 %v19_v0, %v31_v18 }
  0x94   :  { %v29_v22 = vpop.xlane.xlu0 %28 }
  0x95   :  { %v45_v23 = vsub.f32 %v41_v21, %v43_v20  ;;  %v32_v24 = vmul.f32 0.03125, %v29_v22 }
  0x96   :  { %v40_v25 = vpop.xlane.xlu1 %39 }
  0x97   :  { %v47_v26 = vadd.f32 1e-05, %v45_v23  ;;  %v44_v27 = vmul.f32 %v32_v24, %v32_v24  ;;  %v42_v28 = vmul.f32 0.03125, %v40_v25  ;;  %v52_v35 = vsub.f32 %v20_v1, %v32_v24 }
  0x99   :  { %208 = vrsqrt.f32 %v47_v26  ;;  %v46_v29 = vsub.f32 %v42_v28, %v44_v27 }
  0x9b   :  { %v48_v30 = vadd.f32 1e-05, %v46_v29 }
  0x9d   :  { %210 = vrsqrt.f32 %v48_v30 }
  0xa3   :  { %v209_v32 = vpop.eup %208 }
  0xa4   :  { %v53_v33 = vmul.f32 %v209_v32, %v51_v31 }
  0xa6   :  { %v61_v38 = vmul.f32 %v175_v34, %v53_v33 }
  0xa7   :  { %v211_v36 = vpop.eup %210 }
  0xa8   :  { %v54_v37 = vmul.f32 %v211_v36, %v52_v35  ;;  %v69_v41 = vadd.f32 %v176_v39, %v61_v38 }
  0xaa   :  { %v62_v40 = vmul.f32 %v175_v34, %v54_v37 }
  0xac   :  { %v70_v42 = vadd.f32 %v176_v39, %v62_v40 }
  0xae   :  { %v71_v43 = vpack.c.bf16 %v70_v42, %v69_v41 }
  0xb0   :  { %196 = vmatmul.mubr.msk.bf16.vlgmr.msra.gmra.mrb[0].mxu0 %vm23_vm0, %v71_v43 }
 0x183   :  { %v149_v44 = vpop.f32.mrb[0].mxu0 }
 0x184   :  { %157 = vst.msk [vmem:[#allocation2] sm:$0xff] %vm156_vm2, %v149_v44  ;;  %v197_v45 = vpop.f32.mrb[1].mxu0 }
 0x185   :  { %v152_v46 = vpop.f32.mrb[2].mxu0 }
 0x186   :  { %158 = vst.msk [vmem:[#allocation2 + $0x8] sm:$0xff] %vm156_vm2, %v152_v46  ;;  %v198_v47 = vpop.f32.mrb[3].mxu0 }
 0x187   :  { %223 = shalt.err (!%p220_p4)
}
 0x188   :  { %s224_s6 = scalar_lea.hbm %s315_s4, 256 }
 0x189   :  { %p225_p5 = scmp.ne.s32.totalorder %s315_s4, %s224_s6  ;;  %p228_p6 = scmp.lt.u32.totalorder %s224_s6, %s315_s4 }
 0x18b   :  { %p230_p7 = pnand %p228_p6, %p225_p5 }
 0x18d   :  { %233 = shalt.err (!%p230_p7)
}
 0x18e   :  { %s239_s11 = smov 128   ;;  %s240_s12 = smov 8  }
 0x18f   :  { %170 = dma.vmem_to_hbm [thread:$0]  %s165_s30, 256, %s315_s4, [#allocation3], %s239_s11, %s239_s11, %s240_s12  }
 0x190   :  { %234 = dma.done.wait [#allocation3], 256  }
 0x191   :  { %235 = vsyncadd [#allocation3], 4294967040 }
 0x192   :  { %174 = vsyncpa [#allocation3], 1 }

// kernel: _lambda_.15
= control target key start
LH: loop header
LB: loop body
LE: loop exit
PB: predicated region body
PF: predicated region fallthrough
CT: control target
= control target key end

     0   :  { %v199_v0 = vmov 0.0   ;;  %vm200_vm0 = vmmov 0   ;;  %vm142_vm1 = vcmask 261120   ;;  %s268_s1 = inlined_call_operand.vmem [shape: bf16[128,32], index: 1, kind: input, shape index: {}]   ;;  %s269_s0 = inlined_call_operand.vmem [shape: bf16[16,128], index: 0, kind: input, shape index: {}]   ;;  %s270_s2 = inlined_call_operand.vmem [shape: f32[1,32], index: 2, kind: input, shape index: {}]   ;;  %s271_s3 = inlined_call_operand.vmem [shape: f32[16,32], index: 3, kind: input, shape index: {}]   ;;  %s272_s4 = inlined_call_operand.vmem [shape: f32[16,32], index: 4, kind: output, shape index: {}]  }
   0x1   :  { %168 = vmatprep.subr.bf16.mxu0 %v199_v0  ;;  %v190_v1 = vld [vmem:[%s268_s1] sm:$0xff]   ;;  %184 = vmatprep.mubr.msk.bf16.mxu0 %vm200_vm0, %v199_v0  ;;  %v191_v2 = vld [vmem:[%s268_s1 + $0x8] sm:$0xff]   ;;  %v192_v3 = vld [vmem:[%s268_s1 + $0x10] sm:$0xff]  }
   0x2   :  { %169 = vmatpush3.bf16.msra.mxu0 %v190_v1  ;;  %v193_v4 = vld [vmem:[%s268_s1 + $0x18] sm:$0xff]   ;;  %v194_v5 = vld [vmem:[%s268_s1 + $0x20] sm:$0xff]   ;;  %v195_v6 = vld [vmem:[%s268_s1 + $0x28] sm:$0xff]  }
   0x3   :  { %170 = vmatprep.subr.bf16.mxu0 %v199_v0  ;;  %v196_v7 = vld [vmem:[%s268_s1 + $0x30] sm:$0xff]   ;;  %v197_v8 = vld [vmem:[%s268_s1 + $0x38] sm:$0xff]   ;;  %v198_v9 = vld [vmem:[%s269_s0] sm:$0xff]  }
   0x4   :  { %v149_v10 = vld [vmem:[%s270_s2] ss:$0 sm:$0xff]  ;;  %v139_v16 = vld [vmem:[%s271_s3 + $0x8] sm:$0xff] }
   0x5   :  { %v138_v12 = vld [vmem:[%s271_s3] sm:$0xff] }
   0x6   :  { %171 = vmatpush3.bf16.msra.mxu0 %v191_v2 }
   0x7   :  { %172 = vmatprep.subr.bf16.mxu0 %v199_v0 }
   0xa   :  { %173 = vmatpush3.bf16.msra.mxu0 %v192_v3 }
   0xb   :  { %174 = vmatprep.subr.bf16.mxu0 %v199_v0 }
   0xe   :  { %175 = vmatpush3.bf16.msra.mxu0 %v193_v4 }
   0xf   :  { %176 = vmatprep.subr.bf16.mxu0 %v199_v0 }
  0x12   :  { %177 = vmatpush3.bf16.msra.mxu0 %v194_v5 }
  0x13   :  { %178 = vmatprep.subr.bf16.mxu0 %v199_v0 }
  0x16   :  { %179 = vmatpush3.bf16.msra.mxu0 %v195_v6 }
  0x17   :  { %180 = vmatprep.subr.bf16.mxu0 %v199_v0 }
  0x1a   :  { %181 = vmatpush3.bf16.msra.mxu0 %v196_v7 }
  0x1b   :  { %182 = vmatprep.subr.bf16.mxu0 %v199_v0 }
  0x1e   :  { %183 = vmatpush3.bf16.msra.mxu0 %v197_v8 }
  0x21   :  { %185 = vmatmul.mubr.bf16.vlgmr.msra.gmra.mrb[0].mxu0 %v198_v9 }
  0xf4   :  { %v131_v11 = vpop.f32.mrb[0].mxu0 }
  0xf5   :  { %v132_v13 = vadd.f32 %v149_v10, %v131_v11  ;;  %v186_v14 = vpop.f32.mrb[1].mxu0 }
  0xf6   :  { %v134_v15 = vpop.f32.mrb[2].mxu0 }
  0xf7   :  { %v140_v17 = vadd.f32 %v138_v12, %v132_v13  ;;  %v135_v18 = vadd.f32 %v149_v10, %v134_v15  ;;  %v187_v19 = vpop.f32.mrb[3].mxu0 }
  0xf9   :  { %143 = vst.msk [vmem:[%s272_s4] sm:$0xff] %vm142_vm1, %v140_v17  ;;  %v141_v20 = vadd.f32 %v139_v16, %v135_v18 }
  0xfb   :  { %144 = vst.msk [vmem:[%s272_s4 + $0x8] sm:$0xff] %vm142_vm1, %v141_v20 }

</bundles_post_ra>
